<compile_context>
chip_gen: v7x
topology: tpu7x:2x2x1
jax: 0.10.0
libtpu: 0.0.40
codegen_flags: <defaults>
</compile_context>

<pallas_src>
import math

import jax
import jax.numpy as jnp
import numpy as np
from jax.experimental import pallas as pl
from jax.experimental.pallas import tpu as pltpu


# ---------------------------------------------------------------------------
# Constant filter construction (numpy, setup/trace time — mirrors the PyTorch
# module __init__ where the kaiser-sinc filter is a registered buffer).
# ---------------------------------------------------------------------------
def kaiser_sinc_filter1d(cutoff, half_width, kernel_size):
    even = kernel_size % 2 == 0
    half_size = kernel_size // 2
    delta_f = 4 * half_width
    A = 2.285 * (half_size - 1) * math.pi * delta_f + 7.95
    if A > 50.0:
        beta = 0.1102 * (A - 8.7)
    elif A >= 21.0:
        beta = 0.5842 * (A - 21) ** 0.4 + 0.07886 * (A - 21.0)
    else:
        beta = 0.0
    window = np.kaiser(kernel_size, beta)          # == torch.kaiser_window(periodic=False)
    if even:
        time = np.arange(-half_size, half_size) + 0.5
    else:
        time = np.arange(kernel_size) - half_size
    filt = 2 * cutoff * window * np.sinc(2 * cutoff * time)   # np.sinc == torch.sinc
    filt = filt / filt.sum()
    return filt.astype(np.float32)                 # (K,)


def _round_up(n, m):
    return ((n + m - 1) // m) * m


def _make_band_blocks(filt, ratio, tt_out, halo_blk):
    """Fold the K-tap stride-`ratio` FIR into two small constant band blocks.

    out_tile[:, t] = sum_k filt[k] * x_tile[:, ratio*t + k]
    split at column ratio*tt_out into (main, halo) contraction blocks.
    """
    K = filt.shape[0]
    tt_in = ratio * tt_out
    band = np.zeros((tt_in + halo_blk, tt_out), np.float32)
    for t in range(tt_out):
        band[ratio * t: ratio * t + K, t] = filt
    return band[:tt_in], band[tt_in:]              # (tt_in, tt_out), (halo_blk, tt_out)


# ---------------------------------------------------------------------------
# Pallas kernel: one output tile = two banded MXU matmuls (main + halo),
# accumulated in f32.
# ---------------------------------------------------------------------------
def _downsample_kernel(xm_ref, xh_ref, mbm_ref, mbh_ref, o_ref):
    acc = jnp.dot(xm_ref[...], mbm_ref[...], preferred_element_type=jnp.float32)
    acc = acc + jnp.dot(xh_ref[...], mbh_ref[...], preferred_element_type=jnp.float32)
    o_ref[...] = acc.astype(o_ref.dtype)


# Tile parameters (sweep for a given generation; these fit all VMEM budgets).
_TT_OUT = 128       # output-time tile: lane-dense (multiple of 128)
_HALO_BLK = 128     # halo block width (minimum lane-aligned width; >= K - ratio)
_MAX_ROW_TILE = 512  # up to 512 rows (multiple of 8 sublanes) per grid step


def downsample1d_pallas(x, ratio=2, kernel_size=None, compute_dtype=None):
    """DownSample1d forward.  x: (B, C, T) -> (B, C, T_out)."""
    B, C, T = x.shape
    K = int(6 * ratio // 2) * 2 if kernel_size is None else kernel_size
    filt = kaiser_sinc_filter1d(0.5 / ratio, 0.6 / ratio, K)
    even = K % 2 == 0
    pad_left = K // 2 - int(even)
    pad_right = K // 2
    T_out = (T + pad_left + pad_right - K) // ratio + 1

    R = B * C
    TT_OUT = _TT_OUT
    HALO_BLK = _HALO_BLK
    TT_IN = ratio * TT_OUT                         # 256: multiple of MXU contraction granularity
    assert TT_IN % HALO_BLK == 0 and (K - ratio) <= HALO_BLK

    RT = min(_MAX_ROW_TILE, _round_up(R, 8))       # row tile (sublane multiple of 8)
    n_r = pl.cdiv(R, RT)
    R_pad = n_r * RT
    n_t = pl.cdiv(T_out, TT_OUT)
    T_out_pad = n_t * TT_OUT
    T_xp = (n_t + 1) * TT_IN                       # main blocks + in-bounds halo block, 128-aligned

    # --- wrapper prep: fold (B, C) onto sublanes, exact replicate pad, align ---
    x2 = x.reshape(R, T)
    xp = jnp.pad(x2, ((0, 0), (pad_left, pad_right)), mode="edge")
    xp = jnp.pad(xp, ((0, R_pad - R), (0, T_xp - xp.shape[1])))   # zero pad -> sliced away

    cdt = jnp.dtype(compute_dtype) if compute_dtype is not None else x.dtype
    xp = xp.astype(cdt)
    mb_main_np, mb_halo_np = _make_band_blocks(filt, ratio, TT_OUT, HALO_BLK)
    mb_main = jnp.asarray(mb_main_np, cdt)         # (TT_IN, TT_OUT)   constant, grid-resident
    mb_halo = jnp.asarray(mb_halo_np, cdt)         # (HALO_BLK, TT_OUT) constant, grid-resident

    halo_stride = TT_IN // HALO_BLK                # halo block starts right after the main block

    out = pl.pallas_call(
        _downsample_kernel,
        out_shape=jax.ShapeDtypeStruct((R_pad, T_out_pad), x.dtype),
        grid=(n_r, n_t),
        in_specs=[
            # main input tile: rows i, input-time block j (width ratio*TT_OUT)
            pl.BlockSpec((RT, TT_IN), lambda i, j: (i, j)),
            # 128-wide halo tile immediately after the main tile (overlap of the FIR window)
            pl.BlockSpec((RT, HALO_BLK), lambda i, j: (i, (j + 1) * halo_stride)),
            # constant band blocks: same block for every grid step (resident filter)
            pl.BlockSpec((TT_IN, TT_OUT), lambda i, j: (0, 0)),
            pl.BlockSpec((HALO_BLK, TT_OUT), lambda i, j: (0, 0)),
        ],
        out_specs=pl.BlockSpec((RT, TT_OUT), lambda i, j: (i, j)),
        compiler_params=pltpu.CompilerParams(
            dimension_semantics=("parallel", "parallel"),   # rows split across v7x's 2 TCs
            vmem_limit_bytes=32 * 1024 * 1024,
        ),
    )(xp, xp, mb_main, mb_halo)

    return out[:R, :T_out].reshape(B, C, T_out)


# ---------------------------------------------------------------------------
# Pure-JAX reference of the exact PyTorch semantics (replicate pad +
# stride-`ratio` depthwise cross-correlation with the shared kaiser-sinc filter).
# ---------------------------------------------------------------------------
def downsample1d_ref(x, filt, ratio, pad_left, pad_right):
    K = filt.shape[0]
    xp = jnp.pad(x, ((0, 0), (0, 0), (pad_left, pad_right)), mode="edge")
    T_in = xp.shape[-1]
    T_out = (T_in - K) // ratio + 1
    out = jnp.zeros(x.shape[:2] + (T_out,), x.dtype)
    for k in range(K):
        out = out + filt[k] * xp[:, :, k: k + ratio * (T_out - 1) + 1: ratio]
    return out


if __name__ == "__main__":
    ratio = 2
    K = 12
    pad_l, pad_r = K // 2 - 1, K // 2
    filt = jnp.asarray(kaiser_sinc_filter1d(0.5 / ratio, 0.6 / ratio, K))

    fwd_f32 = jax.jit(lambda v: downsample1d_pallas(v, ratio=ratio))
    fwd_bf16 = jax.jit(lambda v: downsample1d_pallas(v, ratio=ratio,
                                                     compute_dtype=jnp.bfloat16))

    # --- small shape consistent with the module: (B, C, T) = (2, 4, 16) ---
    B, C, T = 2, 4, 16
    key = jax.random.PRNGKey(0)
    x = jax.random.normal(key, (B, C, T), jnp.float32)
    T_out = (T + pad_l + pad_r - K) // ratio + 1            # = 8
    out = jax.block_until_ready(fwd_f32(x))
    assert out.shape == (B, C, T_out), out.shape
    assert bool(jnp.all(jnp.isfinite(out)))
    ref = downsample1d_ref(x, filt, ratio, pad_l, pad_r)
    assert bool(jnp.allclose(out, ref, atol=1e-5, rtol=1e-5)), float(
        jnp.max(jnp.abs(out - ref)))

    # --- slightly longer signal: exercises the cross-tile FIR halo (n_t = 2)
    #     and a non-128-multiple T_out.  (Do NOT benchmark at these toy sizes;
    #     wall time here is ~100% pallas_call fixed cost.) ---
    B2, C2, T2 = 2, 4, 300
    x2 = jax.random.normal(jax.random.PRNGKey(0), (B2, C2, T2), jnp.float32)
    T_out2 = (T2 + pad_l + pad_r - K) // ratio + 1          # = 150
    out2 = jax.block_until_ready(fwd_f32(x2))
    assert out2.shape == (B2, C2, T_out2), out2.shape
    ref2 = downsample1d_ref(x2, filt, ratio, pad_l, pad_r)
    assert bool(jnp.allclose(out2, ref2, atol=1e-5, rtol=1e-5)), float(
        jnp.max(jnp.abs(out2 - ref2)))

    # --- bf16-input path (v6e/v7x recommendation): f32 accumulation kept,
    #     loose tolerance for the bf16 quantization of x and the filter. ---
    out2_bf16 = jax.block_until_ready(fwd_bf16(x2))
    assert out2_bf16.shape == (B2, C2, T_out2)
    assert bool(jnp.allclose(out2_bf16.astype(jnp.float32), ref2, atol=1e-1, rtol=5e-2))

    print("KERNEL_OK")
</pallas_src>

<mosaic_0001>
module attributes {stable_mosaic.version = 11 : i64} {
  func.func @_downsample_kernel(%arg0: i32, %arg1: i32, %arg2: memref<8x256xf32, #tpu.memory_space<vmem>>, %arg3: memref<8x128xf32, #tpu.memory_space<vmem>>, %arg4: memref<256x128xf32, #tpu.memory_space<vmem>>, %arg5: memref<128x128xf32, #tpu.memory_space<vmem>>, %arg6: memref<8x128xf32, #tpu.memory_space<vmem>>) attributes {dimension_semantics = [#tpu.dimension_semantics<parallel>, #tpu.dimension_semantics<parallel>], iteration_bounds = array<i64: 1, 1>, scalar_prefetch = 0 : i64, scratch_operands = 0 : i64, tpu.core_type = #tpu.core_type<tc>, window_params = [{transform_indices = @transform_0, window_bounds = array<i64: 8, 256>}, {transform_indices = @transform_1, window_bounds = array<i64: 8, 128>}, {pipeline_mode = #tpu.pipeline_mode<synchronous>, transform_indices = @transform_2, window_bounds = array<i64: 256, 128>}, {pipeline_mode = #tpu.pipeline_mode<synchronous>, transform_indices = @transform_3, window_bounds = array<i64: 128, 128>}, {transform_indices = @transform_4, window_bounds = array<i64: 8, 128>}]} {
    %c0 = arith.constant 0 : index
    %c0_0 = arith.constant 0 : index
    %0 = vector.load %arg2[%c0, %c0_0] : memref<8x256xf32, #tpu.memory_space<vmem>>, vector<8x256xf32>
    %c0_1 = arith.constant 0 : index
    %c0_2 = arith.constant 0 : index
    %1 = vector.load %arg4[%c0_1, %c0_2] : memref<256x128xf32, #tpu.memory_space<vmem>>, vector<256x128xf32>
    %cst = arith.constant dense<0.000000e+00> : vector<8x128xf32>
    %2 = tpu.matmul %0, %1, %cst {dimension_numbers = #tpu.dot_dimension_numbers<[1], [0], [0], [1], [0, 0, 1, 1], [], []>} : vector<8x256xf32>, vector<256x128xf32>, vector<8x128xf32> -> vector<8x128xf32>
    %c0_3 = arith.constant 0 : index
    %c0_4 = arith.constant 0 : index
    %3 = vector.load %arg3[%c0_3, %c0_4] : memref<8x128xf32, #tpu.memory_space<vmem>>, vector<8x128xf32>
    %c0_5 = arith.constant 0 : index
    %c0_6 = arith.constant 0 : index
    %4 = vector.load %arg5[%c0_5, %c0_6] : memref<128x128xf32, #tpu.memory_space<vmem>>, vector<128x128xf32>
    %cst_7 = arith.constant dense<0.000000e+00> : vector<8x128xf32>
    %5 = tpu.matmul %3, %4, %cst_7 {dimension_numbers = #tpu.dot_dimension_numbers<[1], [0], [0], [1], [0, 0, 1, 1], [], []>} : vector<8x128xf32>, vector<128x128xf32>, vector<8x128xf32> -> vector<8x128xf32>
    %6 = arith.addf %2, %5 : vector<8x128xf32>
    %c0_8 = arith.constant 0 : index
    %c0_9 = arith.constant 0 : index
    %7 = vector.load %arg6[%c0_8, %c0_9] : memref<8x128xf32, #tpu.memory_space<vmem>>, vector<8x128xf32>
    tpu.vector_store %arg6[%c0_8, %c0_9], %6 {strides = array<i32>} : memref<8x128xf32, #tpu.memory_space<vmem>>, vector<8x128xf32>,
    return
  }
  func.func @transform_0(%arg0: i32, %arg1: i32) -> (i32, i32) {
    %c0_i32 = arith.constant 0 : i32
    return %arg0, %arg1 : i32, i32
  }
  func.func @transform_1(%arg0: i32, %arg1: i32) -> (i32, i32) {
    %c1_i32 = arith.constant 1 : i32
    %0 = arith.addi %arg1, %c1_i32 : i32
    %c2_i32 = arith.constant 2 : i32
    %1 = arith.muli %0, %c2_i32 : i32
    %c0_i32 = arith.constant 0 : i32
    return %arg0, %1 : i32, i32
  }
  func.func @transform_2(%arg0: i32, %arg1: i32) -> (i32, i32) {
    %c0_i32 = arith.constant 0 : i32
    %c0_i32_0 = arith.constant 0 : i32
    %c0_i32_1 = arith.constant 0 : i32
    return %c0_i32, %c0_i32_0 : i32, i32
  }
  func.func @transform_3(%arg0: i32, %arg1: i32) -> (i32, i32) {
    %c0_i32 = arith.constant 0 : i32
    %c0_i32_0 = arith.constant 0 : i32
    %c0_i32_1 = arith.constant 0 : i32
    return %c0_i32, %c0_i32_0 : i32, i32
  }
  func.func @transform_4(%arg0: i32, %arg1: i32) -> (i32, i32) {
    %c0_i32 = arith.constant 0 : i32
    return %arg0, %arg1 : i32, i32
  }
}

</mosaic_0001>

<bundles_post_ra>
// kernel: _lambda_.1
= control target key start
LH: loop header
LB: loop body
LE: loop exit
PB: predicated region body
PF: predicated region fallthrough
CT: control target
= control target key end

     0   :  { %9 = vsyncpa [#allocation3], 0  ;;  %s592_s0 = inlined_call_operand.vmem [shape: f32[8,512], index: 0, kind: input, shape index: {}, may-alias: {0,1}]   ;;  %s593_s1 = inlined_call_operand.vmem [shape: f32[8,512], index: 1, kind: input, shape index: {}, may-alias: {0,1}]   ;;  %s594_s2 = inlined_call_operand.hbm [shape: f32[256,128], index: 2, kind: input, shape index: {}]   ;;  %s595_s3 = inlined_call_operand.hbm [shape: f32[128,128], index: 3, kind: input, shape index: {}]   ;;  %s596_s4 = inlined_call_operand.hbm [shape: f32[8,128], index: 4, kind: output, shape index: {}]  }
   0x1   :  { %10 = vsyncpa [#allocation6], 0 }
   0x2   :  { %11 = vsyncpa [#allocation4], 0  ;;  %s506_s15 = smov [#allocation2]   ;;  %s434_s19 = scalar_lea.hbm %s594_s2, 4096 }
   0x3   :  { %s29_s16 = sshll.u32 %s506_s15, 4  ;;  %p435_p0 = scmp.ne.s32.totalorder %s594_s2, %s434_s19  ;;  %s30_s16 = int_to_ptr.vmem [resolvable:$true] %s29_s16 }
   0x4   :  { %p438_p1 = scmp.lt.u32.totalorder %s434_s19, %s594_s2 }
   0x6   :  { %p440_p2 = pnand %p438_p1, %p435_p0 }
   0x8   :  { %443 = shalt.err (!%p440_p2)
}
   0x9   :  { %s444_s24 = scalar_lea.vmem %s30_s16, 4096  ;;  %p449_p4 = scmp.lt.s32.totalorder %s30_s16, %s30_s16 }
   0xa   :  { %p445_p3 = scmp.ne.s32.totalorder %s30_s16, %s444_s24  ;;  %p450_p5 = scmp.lt.s32.totalorder %s444_s24, %s444_s24 }
   0xc   :  { %p451_p6 = por %p450_p5, %p449_p4 }
   0xe   :  { %p452_p7 = pnand %p451_p6, %p445_p3 }
  0x10   :  { %455 = shalt.err (!%p452_p7)
}
  0x11   :  { %s507_s25 = smov 128   ;;  %s508_s26 = smov 8  }
  0x12   :  { %35 = dma.hbm_to_vmem [thread:$0]  %s594_s2, 4096, %s30_s16, [#allocation3], %s507_s25, %s507_s25, %s508_s26  }
  0x13   :  { %s509_s29 = smov [#allocation5]   ;;  %s456_s7 = scalar_lea.hbm %s595_s3, 2048 }
  0x14   :  { %s41_s30 = sshll.u32 %s509_s29, 4  ;;  %p457_p8 = scmp.ne.s32.totalorder %s595_s3, %s456_s7  ;;  %s42_s30 = int_to_ptr.vmem [resolvable:$true] %s41_s30 }
  0x15   :  { %p460_p9 = scmp.lt.u32.totalorder %s456_s7, %s595_s3 }
  0x17   :  { %p462_p10 = pnand %p460_p9, %p457_p8 }
  0x19   :  { %465 = shalt.err (!%p462_p10)
}
  0x1a   :  { %s466_s12 = scalar_lea.vmem %s42_s30, 2048  ;;  %p471_p12 = scmp.lt.s32.totalorder %s42_s30, %s42_s30 }
  0x1b   :  { %p467_p11 = scmp.ne.s32.totalorder %s42_s30, %s466_s12  ;;  %p472_p13 = scmp.lt.s32.totalorder %s466_s12, %s466_s12 }
  0x1d   :  { %p473_p0 = por %p472_p13, %p471_p12 }
  0x1f   :  { %p474_p1 = pnand %p473_p0, %p467_p11 }
  0x21   :  { %477 = shalt.err (!%p474_p1)
}
  0x22   :  { %47 = dma.hbm_to_vmem [thread:$0]  %s595_s3, 2048, %s42_s30, [#allocation6], %s507_s25, %s507_s25, %s508_s26  }
  0x23   :  { %500 = dma.done.wait [#allocation3], 4096  }
  0x24   :  { %501 = vsyncadd [#allocation3], 4294963200 }
  0x25   :  { %502 = dma.done.wait [#allocation6], 2048  }
  0x26   :  { %503 = vsyncadd [#allocation6], 4294965248  ;;  %v510_v0 = vmov 0.0|0.0   ;;  %vm511_vm0 = vmmov 0   ;;  %v512_v1 = vmov 0.0   ;;  %v86_v2 = vld [vmem:[#allocation2 + $0x80] sm:$0xff] }
  0x27   :  { %370 = vmatprep.subr.bf16.mxu0 %v510_v0  ;;  %367 = vmatprep.mubr.msk.f32.mxu0 %vm511_vm0, %v512_v1  ;;  %v87_v3 = vld [vmem:[#allocation2 + $0x88] sm:$0xff]  ;;  %v70_v4 = vld [vmem:[#allocation2] sm:$0xff]  ;;  %v88_v11 = vld [vmem:[#allocation2 + $0x90] sm:$0xff]  ;;  %s513_s19 = smov [#allocation7]  }
  0x28   :  { %v394_v5 = vpack.c.bf16 %v87_v3, %v86_v2  ;;  %v71_v6 = vld [vmem:[#allocation2 + $0x8] sm:$0xff]  ;;  %v103_v7 = vld [vmem:[#allocation5] sm:$0xff]  ;;  %v89_v12 = vld [vmem:[#allocation2 + $0x98] sm:$0xff]  ;;  %s266_s20 = sshll.u32 %s513_s19, 4  ;;  %s267_s20 = int_to_ptr.vmem [resolvable:$true] %s266_s20 }
  0x29   :  { %v104_v8 = vld [vmem:[#allocation5 + $0x8] sm:$0xff]  ;;  %v396_v9 = vpack.c.bf16 %v71_v6, %v70_v4  ;;  %v72_v13 = vld [vmem:[#allocation2 + $0x10] sm:$0xff]  ;;  %v398_v14 = vpack.c.bf16 %v89_v12, %v88_v11  ;;  %v73_v15 = vld [vmem:[#allocation2 + $0x18] sm:$0xff]  ;;  %s478_s21 = scalar_lea.vmem %s267_s20, 128  ;;  %p483_p3 = scmp.lt.s32.totalorder %s267_s20, %s267_s20 }
  0x2a   :  { %v371_v10 = vpack.c.bf16 %v104_v8, %v103_v7  ;;  %395 = vmatprep.subr.bf16.mxu1 %v394_v5  ;;  %v105_v16 = vld [vmem:[#allocation5 + $0x10] sm:$0xff]  ;;  %v106_v17 = vld [vmem:[#allocation5 + $0x18] sm:$0xff]  ;;  %v400_v18 = vpack.c.bf16 %v73_v15, %v72_v13  ;;  %v90_v20 = vld [vmem:[#allocation2 + $0xa0] sm:$0xff]  ;;  %p479_p2 = scmp.ne.s32.totalorder %s267_s20, %s478_s21  ;;  %p484_p4 = scmp.lt.s32.totalorder %s478_s21, %s478_s21 }
  0x2b   :  { %397 = vmatpush3.bf16.msra.mxu1 %v396_v9  ;;  %v374_v19 = vpack.c.bf16 %v106_v17, %v105_v16  ;;  %v91_v21 = vld [vmem:[#allocation2 + $0xa8] sm:$0xff]  ;;  %v74_v22 = vld [vmem:[#allocation2 + $0x20] sm:$0xff]  ;;  %v92_v27 = vld [vmem:[#allocation2 + $0xb0] sm:$0xff] }
  0x2c   :  { %372 = vmatpush3.bf16.msra.mxu0 %v371_v10  ;;  %399 = vmatprep.subr.bf16.mxu1 %v398_v14  ;;  %v402_v23 = vpack.c.bf16 %v91_v21, %v90_v20  ;;  %v75_v24 = vld [vmem:[#allocation2 + $0x28] sm:$0xff]  ;;  %v107_v25 = vld [vmem:[#allocation5 + $0x20] sm:$0xff]  ;;  %v93_v28 = vld [vmem:[#allocation2 + $0xb8] sm:$0xff]  ;;  %p485_p5 = por %p484_p4, %p483_p3 }
  0x2d   :  { %373 = vmatprep.subr.bf16.mxu0 %v510_v0  ;;  %v108_v26 = vld [vmem:[#allocation5 + $0x28] sm:$0xff]  ;;  %v404_v29 = vpack.c.bf16 %v75_v24, %v74_v22  ;;  %v76_v31 = vld [vmem:[#allocation2 + $0x30] sm:$0xff]  ;;  %v406_v32 = vpack.c.bf16 %v93_v28, %v92_v27  ;;  %v77_v33 = vld [vmem:[#allocation2 + $0x38] sm:$0xff] }
  0x2e   :  { %v377_v30 = vpack.c.bf16 %v108_v26, %v107_v25  ;;  %v109_v34 = vld [vmem:[#allocation5 + $0x30] sm:$0xff]  ;;  %v110_v35 = vld [vmem:[#allocation5 + $0x38] sm:$0xff]  ;;  %v94_v36 = vld [vmem:[#allocation2 + $0xc0] sm:$0xff]  ;;  %v408_v38 = vpack.c.bf16 %v77_v33, %v76_v31  ;;  %p486_p6 = pnand %p485_p5, %p479_p2 }
  0x2f   :  { %401 = vmatpush3.bf16.msra.mxu1 %v400_v18  ;;  %v95_v37 = vld [vmem:[#allocation2 + $0xc8] sm:$0xff]  ;;  %v380_v39 = vpack.c.bf16 %v110_v35, %v109_v34  ;;  %v78_v40 = vld [vmem:[#allocation2 + $0x40] sm:$0xff]  ;;  %v96_v45 = vld [vmem:[#allocation2 + $0xd0] sm:$0xff] }
  0x30   :  { %375 = vmatpush3.bf16.msra.mxu0 %v374_v19  ;;  %403 = vmatprep.subr.bf16.mxu1 %v402_v23  ;;  %v410_v41 = vpack.c.bf16 %v95_v37, %v94_v36  ;;  %v79_v42 = vld [vmem:[#allocation2 + $0x48] sm:$0xff]  ;;  %v111_v43 = vld [vmem:[#allocation5 + $0x40] sm:$0xff]  ;;  %v97_v46 = vld [vmem:[#allocation2 + $0xd8] sm:$0xff] }
  0x31   :  { %376 = vmatprep.subr.bf16.mxu0 %v510_v0  ;;  %v112_v44 = vld [vmem:[#allocation5 + $0x48] sm:$0xff]  ;;  %v412_v47 = vpack.c.bf16 %v79_v42, %v78_v40  ;;  %v80_v49 = vld [vmem:[#allocation2 + $0x50] sm:$0xff]  ;;  %v414_v51 = vpack.c.bf16 %v97_v46, %v96_v45  ;;  %v81_v52 = vld [vmem:[#allocation2 + $0x58] sm:$0xff] }
  0x32   :  { %v383_v48 = vpack.c.bf16 %v112_v44, %v111_v43  ;;  %v69_v50 = vld [vmem:[%s592_s0 + $0x8] sm:$0xff]  ;;  %v113_v53 = vld [vmem:[#allocation5 + $0x50] sm:$0xff]  ;;  %v114_v54 = vld [vmem:[#allocation5 + $0x58] sm:$0xff]  ;;  %v416_v57 = vpack.c.bf16 %v81_v52, %v80_v49 }
  0x33   :  { %405 = vmatpush3.bf16.msra.mxu1 %v404_v29  ;;  %v98_v55 = vld [vmem:[#allocation2 + $0xe0] sm:$0xff]  ;;  %v99_v56 = vld [vmem:[#allocation2 + $0xe8] sm:$0xff]  ;;  %253 = vmatprep.mubr.f32.mxu1 %v69_v50  ;;  %v386_v58 = vpack.c.bf16 %v114_v54, %v113_v53  ;;  %v100_v1 = vld [vmem:[#allocation2 + $0xf0] sm:$0xff] }
  0x34   :  { %378 = vmatpush3.bf16.msra.mxu0 %v377_v30  ;;  %407 = vmatprep.subr.bf16.mxu1 %v406_v32  ;;  %v82_v59 = vld [vmem:[#allocation2 + $0x60] sm:$0xff]  ;;  %v418_v60 = vpack.c.bf16 %v99_v56, %v98_v55  ;;  %v83_v61 = vld [vmem:[#allocation2 + $0x68] sm:$0xff]  ;;  %v101_v2 = vld [vmem:[#allocation2 + $0xf8] sm:$0xff] }
  0x35   :  { %379 = vmatprep.subr.bf16.mxu0 %v510_v0  ;;  %v115_v62 = vld [vmem:[#allocation5 + $0x60] sm:$0xff]  ;;  %v116_v63 = vld [vmem:[#allocation5 + $0x68] sm:$0xff]  ;;  %v420_v3 = vpack.c.bf16 %v83_v61, %v82_v59  ;;  %v84_v5 = vld [vmem:[#allocation2 + $0x70] sm:$0xff]  ;;  %v422_v6 = vpack.c.bf16 %v101_v2, %v100_v1 }
  0x36   :  { %v389_v4 = vpack.c.bf16 %v116_v63, %v115_v62  ;;  %v85_v7 = vld [vmem:[#allocation2 + $0x78] sm:$0xff]  ;;  %v117_v8 = vld [vmem:[#allocation5 + $0x70] sm:$0xff]  ;;  %v68_v12 = vld [vmem:[%s592_s0] sm:$0xff] }
  0x37   :  { %409 = vmatpush3.bf16.msra.mxu1 %v408_v38  ;;  %v118_v9 = vld [vmem:[#allocation5 + $0x78] sm:$0xff]  ;;  %v424_v10 = vpack.c.bf16 %v85_v7, %v84_v5  ;;  %v282_v13 = vld [vmem:[%s593_s1 + $0x10] sm:$0xff] }
  0x38   :  { %381 = vmatpush3.bf16.msra.mxu0 %v380_v39  ;;  %411 = vmatprep.subr.bf16.mxu1 %v410_v41  ;;  %v392_v11 = vpack.c.bf16 %v118_v9, %v117_v8 }
  0x39   :  { %382 = vmatprep.subr.bf16.mxu0 %v510_v0 }
  0x3b   :  { %413 = vmatpush3.bf16.msra.mxu1 %v412_v47 }
  0x3c   :  { %384 = vmatpush3.bf16.msra.mxu0 %v383_v48  ;;  %415 = vmatprep.subr.bf16.mxu1 %v414_v51 }
  0x3d   :  { %385 = vmatprep.subr.bf16.mxu0 %v510_v0 }
  0x3f   :  { %417 = vmatpush3.bf16.msra.mxu1 %v416_v57 }
  0x40   :  { %387 = vmatpush3.bf16.msra.mxu0 %v386_v58  ;;  %419 = vmatprep.subr.bf16.mxu1 %v418_v60 }
  0x41   :  { %388 = vmatprep.subr.bf16.mxu0 %v510_v0 }
  0x43   :  { %421 = vmatpush3.bf16.msra.mxu1 %v420_v3 }
  0x44   :  { %390 = vmatpush3.bf16.msra.mxu0 %v389_v4  ;;  %423 = vmatprep.subr.bf16.mxu1 %v422_v6 }
  0x45   :  { %391 = vmatprep.subr.bf16.mxu0 %v510_v0 }
  0x47   :  { %425 = vmatpush3.bf16.msra.mxu1 %v424_v10 }
  0x48   :  { %393 = vmatpush3.bf16.msra.mxu0 %v392_v11 }
  0x4a   :  { %254 = vmatmul.mubr.f32.vlgmr.msra.gmra.mrb[0].mxu1 %v68_v12 }
  0x4b   :  { %368 = vmatmul.mubr.f32.vlgmr.msra.gmra.mrb[0].mxu0 %v282_v13 }
 0x11d   :  { %v332_v14 = vpop.f32.mrb[0].mxu1 }
 0x11e   :  { %v185_v15 = vpop.f32.mrb[0].mxu0  ;;  %v333_v16 = vpop.f32.mrb[1].mxu1 }
 0x11f   :  { %v369_v17 = vpop.f32.mrb[1].mxu0  ;;  %v334_v18 = vadd.f32 %v333_v16, %v332_v14 }
 0x121   :  { %v256_v0 = vadd.f32 %v334_v18, %v185_v15 }
 0x123   :  { %259 = vst [vmem:[#allocation7] sm:$0xff] %v256_v0 }
 0x124   :  { %489 = shalt.err (!%p486_p6)
}
 0x125   :  { %s490_s22 = scalar_lea.hbm %s596_s4, 128 }
 0x126   :  { %p491_p7 = scmp.ne.s32.totalorder %s596_s4, %s490_s22  ;;  %p494_p8 = scmp.lt.u32.totalorder %s490_s22, %s596_s4 }
 0x128   :  { %p496_p9 = pnand %p494_p8, %p491_p7 }
 0x12a   :  { %499 = shalt.err (!%p496_p9)
}
 0x12b   :  { %269 = dma.vmem_to_hbm [thread:$0]  %s267_s20, 128, %s596_s4, [#allocation4]  }
 0x12c   :  { %504 = dma.done.wait [#allocation4], 128  }
 0x12d   :  { %505 = vsyncadd [#allocation4], 4294967168 }
 0x12e   :  { %273 = vsyncpa [#allocation3], 1 }
 0x12f   :  { %274 = vsyncpa [#allocation6], 1 }
 0x130   :  { %275 = vsyncpa [#allocation4], 1 }

</bundles_post_ra>
